<compile_context>
chip_gen: v7x
topology: tpu7x:2x2x1
jax: 0.10.0
libtpu: 0.0.40
codegen_flags: <defaults>
</compile_context>

<pallas_src>
import functools

import jax
import jax.numpy as jnp
from jax import lax
from jax.experimental import pallas as pl
from jax.experimental.pallas import tpu as pltpu


_LANE = 128
_CHUNK = 512          # in-kernel chunk width (lanes); multiple of 128
_UNROLL = 4           # fori_loop unroll for the chunk sweep
# Per-input-buffer VMEM budget.  Double-buffered => ~32 MiB of input buffers,
# which (plus the tiny lane accumulators and headroom) stays inside v7x's
# 64 MiB per-TensorCore VMEM and is well past the tile-size knee where
# mem-bound kernels reach ~85% of the HBM roofline on every generation.
_BLOCK_BYTES_BUDGET = 16 * 1024 * 1024


def _round_up(x, m):
    return (x + m - 1) // m * m


# ----------------------------------------------------------------------------
# Pallas kernel: per-row, per-lane partial sums of squares.
#   g_ref : (tb, tn) block of the flattened gradient, native dtype.
#   ss_ref: (tb, cw) f32 lane-dense accumulator (output block, resident across
#           the reduction grid axis, which is last).
# ----------------------------------------------------------------------------
def _gp_rowsumsq_kernel(g_ref, ss_ref, *, n_total, tn, cw, nk, nk_total,
                        ragged, has_overflow):
    kk = pl.program_id(2)                       # position along the reduction
    kg = pl.program_id(1) * nk + kk             # global block index along N
    tb = g_ref.shape[0]
    n_chunks = tn // cw
    unroll = min(_UNROLL, n_chunks)

    @pl.when(kk == 0)
    def _init():
        ss_ref[...] = jnp.zeros_like(ss_ref)

    def accumulate(masked):
        # Chunked accumulation: load one (tb, cw) chunk, upcast in-register,
        # square and add into a vreg-resident carry.  No block-wide f32
        # temporaries and no (tb, tn//128, 128) relayout through VMEM.
        if masked:
            valid = n_total - kg * tn           # lanes of this block that exist

        def body(c, acc):
            off = pl.multiple_of(c * cw, cw)
            chunk = g_ref[:, pl.ds(off, cw)].astype(jnp.float32)
            if masked:
                col = lax.broadcasted_iota(jnp.int32, (tb, cw), 1) + off
                chunk = jnp.where(col < valid, chunk, 0.0)  # mask BEFORE square
            return acc + chunk * chunk

        ss_ref[...] = lax.fori_loop(0, n_chunks, body, ss_ref[...],
                                    unroll=unroll)

    if ragged:
        # Only the globally-last block along N has a ragged tail; keep the
        # iota/compare/select off the steady-state blocks (cold path skipped
        # at runtime by pl.when).
        is_tail = kg == (nk_total - 1)
        steady = jnp.logical_not(is_tail)
        if has_overflow:
            steady = jnp.logical_and(steady, kg < nk_total)
        pl.when(steady)(lambda: accumulate(False))
        pl.when(is_tail)(lambda: accumulate(True))
    else:
        if has_overflow:
            pl.when(kg < nk_total)(lambda: accumulate(False))
        else:
            accumulate(False)


# ----------------------------------------------------------------------------
# Pallas-backed per-row sum of squares: (B, N) -> (B,) f32
# ----------------------------------------------------------------------------
def _rowsumsq(g_flat: jax.Array, *, block_budget_bytes=_BLOCK_BYTES_BUDGET):
    B, N = g_flat.shape
    itemsize = jnp.dtype(g_flat.dtype).itemsize

    # dtype-aware batch tile so packed vregs are full ([8,128] f32, [16,128]
    # bf16, [32,128] int8); fall back to the full batch (always legal).
    sub = {4: 8, 2: 16, 1: 32}.get(itemsize, 8)
    tb = sub if (B % sub == 0 and B > sub) else B
    nb = B // tb

    # Chunk width (lanes) used inside the kernel; the lane tile must be a
    # multiple of it.  No wrapper-side padding: ragged N is masked in-kernel.
    n_pad128 = _round_up(N, _LANE)
    cw = _CHUNK if n_pad128 >= _CHUNK else n_pad128

    # Largest lane tile (multiple of cw) fitting the per-buffer VMEM budget in
    # the *native* dtype (bf16 input automatically doubles tn).
    tn_budget = max(cw, (block_budget_bytes // (tb * itemsize)) // cw * cw)
    tn = min(tn_budget, _round_up(N, cw))

    nk_total = pl.cdiv(N, tn)

    # v7x: if the batch axis has a single block, split the N sweep 2-way on a
    # second 'parallel' axis so both TensorCores get their own HBM stream.
    split = 2 if (nb == 1 and nk_total >= 2) else 1
    nk = pl.cdiv(nk_total, split)
    has_overflow = split * nk > nk_total        # odd block count -> one dup block

    if has_overflow:
        def in_idx(i, s, kk):
            # Clamp the duplicated trailing block in-bounds; the kernel skips
            # its accumulation via the kg < nk_total guard.
            return (i, jnp.minimum(s * nk + kk, nk_total - 1))
    else:
        def in_idx(i, s, kk):
            return (i, s * nk + kk)

    def out_idx(i, s, kk):
        return (i, s)

    ragged = (N % tn) != 0

    kernel = functools.partial(
        _gp_rowsumsq_kernel,
        n_total=N, tn=tn, cw=cw, nk=nk, nk_total=nk_total,
        ragged=ragged, has_overflow=has_overflow)

    in_block_bytes = tb * tn * itemsize
    out_block_bytes = tb * cw * 4
    vmem_limit = int(2 * in_block_bytes + 2 * out_block_bytes + (4 << 20))

    ss_lanes = pl.pallas_call(
        kernel,
        out_shape=jax.ShapeDtypeStruct((B, split * cw), jnp.float32),
        grid_spec=pltpu.PrefetchScalarGridSpec(
            num_scalar_prefetch=0,
            grid=(nb, split, nk),
            in_specs=[pl.BlockSpec((tb, tn), in_idx)],
            out_specs=pl.BlockSpec((tb, cw), out_idx),
        ),
        compiler_params=pltpu.CompilerParams(
            dimension_semantics=("parallel", "parallel", "arbitrary"),
            vmem_limit_bytes=vmem_limit,
        ),
        cost_estimate=pl.CostEstimate(
            flops=2 * B * N,
            transcendentals=0,
            bytes_accessed=B * N * itemsize + B * split * cw * 4,
        ),
    )(g_flat)

    # Tiny O(B * split * cw) epilogue in plain JAX: the single cross-lane reduce.
    return ss_lanes.sum(axis=1)  # (B,)


def _loss_from_sumsq(ss: jax.Array) -> jax.Array:
    norm = jnp.sqrt(ss)
    return jnp.mean((norm - 1.0) ** 2)


# ----------------------------------------------------------------------------
# Differentiable penalty: loss = mean_b ( ||g_b||_2 - 1 )^2
# custom_vjp so the penalty participates in the critic's parameter gradients.
# ----------------------------------------------------------------------------
@jax.custom_vjp
def gradient_penalty_from_grad(grad_interp_flat: jax.Array) -> jax.Array:
    """grad_interp_flat: (B, N) array. Returns the scalar f32 penalty."""
    return _loss_from_sumsq(_rowsumsq(grad_interp_flat))


def _gp_fwd(grad_interp_flat):
    ss = _rowsumsq(grad_interp_flat)
    return _loss_from_sumsq(ss), (grad_interp_flat, ss)


def _gp_bwd(res, ct):
    g, ss = res
    B = g.shape[0]
    norm = jnp.sqrt(ss)
    # NOTE: the eps guard returns a zero gradient near norm==0 instead of the
    # inf/NaN PyTorch autograd would produce; standard WGAN-GP stabilization.
    coef = (2.0 / B) * (norm - 1.0) / jnp.maximum(norm, 1e-12)
    dg = (ct * coef)[:, None] * g.astype(jnp.float32)
    return (dg.astype(g.dtype),)


gradient_penalty_from_grad.defvjp(_gp_fwd, _gp_bwd)


# ----------------------------------------------------------------------------
# Module-equivalent forward: reproduces
#   autograd.grad(outputs=crit(interp), inputs=interp, grad_outputs=ones)
# ----------------------------------------------------------------------------
def gradient_penalty_loss(critic_fn, interp: jax.Array) -> jax.Array:
    interp_crit, vjp_fn = jax.vjp(critic_fn, interp)
    grad_outputs = jnp.ones_like(interp_crit)      # get_grad_outputs(...)
    (grad_interp,) = vjp_fn(grad_outputs)          # autograd.grad(..., ones)
    B = grad_interp.shape[0]
    grad_flat = grad_interp.reshape(B, -1)         # .view(B, -1)
    return gradient_penalty_from_grad(grad_flat)


# ----------------------------------------------------------------------------
# Demo / self-check
# ----------------------------------------------------------------------------
if __name__ == "__main__":
    key = jax.random.PRNGKey(0)
    k_x, k_w, k_g2, k_g3 = jax.random.split(key, 4)

    # --- Main check: module-equivalent forward at small NCHW shapes. ---
    B, C, H, W = 2, 4, 16, 16                      # N = 4*16*16 = 1024
    interp = jax.random.normal(k_x, (B, C, H, W), dtype=jnp.float32)
    w_crit = jax.random.normal(k_w, (C, H, W), dtype=jnp.float32) * 0.1

    def critic_fn(x):
        # (B, C, H, W) -> (B,) per-sample critic score.
        return jnp.sum(jnp.tanh(x * w_crit[None]), axis=(1, 2, 3))

    loss = jax.jit(functools.partial(gradient_penalty_loss, critic_fn))(interp)
    jax.block_until_ready(loss)

    # Pure-JAX reference of the same forward.
    _, vjp_fn = jax.vjp(critic_fn, interp)
    (g_full,) = vjp_fn(jnp.ones((B,), jnp.float32))
    g_flat = g_full.reshape(B, -1)
    ref = jnp.mean((jnp.linalg.norm(g_flat, axis=1) - 1.0) ** 2)
    assert jnp.allclose(loss, ref, rtol=1e-5, atol=1e-6), (loss, ref)

    # --- Custom VJP (needed for real WGAN-GP training steps). ---
    d_kernel = jax.jit(jax.grad(gradient_penalty_from_grad))(g_flat)
    jax.block_until_ready(d_kernel)
    d_ref = jax.grad(
        lambda g: jnp.mean((jnp.sqrt(jnp.sum(g * g, axis=1)) - 1.0) ** 2)
    )(g_flat)
    assert jnp.allclose(d_kernel, d_ref, rtol=1e-4, atol=1e-6)

    # --- Ragged-N path (N not a multiple of 128): in-kernel tail mask. ---
    g2 = jax.random.normal(k_g2, (2, 1000), dtype=jnp.float32)
    loss2 = gradient_penalty_from_grad(g2)
    ref2 = jnp.mean((jnp.linalg.norm(g2, axis=1) - 1.0) ** 2)
    assert jnp.allclose(loss2, ref2, rtol=1e-5, atol=1e-6), (loss2, ref2)

    # --- Multi-block reduction + 2-way split + overflow clamp, forced with a
    #     tiny per-block budget so it is exercised at small shapes. ---
    g3 = jax.random.normal(k_g3, (2, 5000), dtype=jnp.float32)
    ss3 = _rowsumsq(g3, block_budget_bytes=16 * 1024)
    ref3 = jnp.sum(g3.astype(jnp.float32) ** 2, axis=1)
    assert jnp.allclose(ss3, ref3, rtol=1e-5, atol=1e-5), (ss3, ref3)

    print("KERNEL_OK")
</pallas_src>

<mosaic_0001>
module attributes {stable_mosaic.version = 11 : i64} {
  func.func @_gp_rowsumsq_kernel(%arg0: i32, %arg1: i32, %arg2: i32, %arg3: memref<2x1024xf32, #tpu.memory_space<vmem>>, %arg4: memref<2x512xf32, #tpu.memory_space<vmem>>) attributes {dimension_semantics = [#tpu.dimension_semantics<parallel>, #tpu.dimension_semantics<parallel>, #tpu.dimension_semantics<arbitrary>], iteration_bounds = array<i64: 1, 1, 1>, scalar_prefetch = 0 : i64, scratch_operands = 0 : i64, tpu.core_type = #tpu.core_type<tc>, window_params = [{transform_indices = @transform_0, window_bounds = array<i64: 2, 1024>}, {transform_indices = @transform_1, window_bounds = array<i64: 2, 512>}]} {
    %c0_i32 = arith.constant 0 : i32
    %0 = arith.cmpi eq, %arg2, %c0_i32 : i32
    %1 = arith.extui %0 : i1 to i32
    %c0_i32_0 = arith.constant 0 : i32
    %2 = arith.cmpi ne, %1, %c0_i32_0 : i32
    scf.if %2 {
      %cst = arith.constant 0.000000e+00 : f32
      %17 = vector.broadcast %cst : f32 to vector<2x512xf32>
      %c0_8 = arith.constant 0 : index
      %c0_9 = arith.constant 0 : index
      %18 = vector.load %arg4[%c0_8, %c0_9] : memref<2x512xf32, #tpu.memory_space<vmem>>, vector<2x512xf32>
      tpu.vector_store %arg4[%c0_8, %c0_9], %17 {strides = array<i32>} : memref<2x512xf32, #tpu.memory_space<vmem>>, vector<2x512xf32>,
    } else {
    }
    %c0 = arith.constant 0 : index
    %c0_1 = arith.constant 0 : index
    %3 = vector.load %arg4[%c0, %c0_1] : memref<2x512xf32, #tpu.memory_space<vmem>>, vector<2x512xf32>
    %c0_i32_2 = arith.constant 0 : i32
    %c512_i32 = arith.constant 512 : i32
    %4 = arith.muli %c0_i32_2, %c512_i32 : i32
    %5 = tpu.assume_multiple %4, 512 : i32
    %c0_3 = arith.constant 0 : index
    %6 = arith.index_cast %5 : i32 to index
    %7 = vector.load %arg3[%c0_3, %6] : memref<2x1024xf32, #tpu.memory_space<vmem>>, vector<2x512xf32>
    %8 = arith.mulf %7, %7 : vector<2x512xf32>
    %9 = arith.addf %3, %8 : vector<2x512xf32>
    %c1_i32 = arith.constant 1 : i32
    %c512_i32_4 = arith.constant 512 : i32
    %10 = arith.muli %c1_i32, %c512_i32_4 : i32
    %11 = tpu.assume_multiple %10, 512 : i32
    %c0_5 = arith.constant 0 : index
    %12 = arith.index_cast %11 : i32 to index
    %13 = vector.load %arg3[%c0_5, %12] : memref<2x1024xf32, #tpu.memory_space<vmem>>, vector<2x512xf32>
    %14 = arith.mulf %13, %13 : vector<2x512xf32>
    %15 = arith.addf %9, %14 : vector<2x512xf32>
    %c2_i32 = arith.constant 2 : i32
    %c0_6 = arith.constant 0 : index
    %c0_7 = arith.constant 0 : index
    %16 = vector.load %arg4[%c0_6, %c0_7] : memref<2x512xf32, #tpu.memory_space<vmem>>, vector<2x512xf32>
    tpu.vector_store %arg4[%c0_6, %c0_7], %15 {strides = array<i32>} : memref<2x512xf32, #tpu.memory_space<vmem>>, vector<2x512xf32>,
    return
  }
  func.func @transform_0(%arg0: i32, %arg1: i32, %arg2: i32) -> (i32, i32) {
    %c1_i32 = arith.constant 1 : i32
    %0 = arith.muli %arg1, %c1_i32 : i32
    %1 = arith.addi %0, %arg2 : i32
    %c0_i32 = arith.constant 0 : i32
    return %arg0, %1 : i32, i32
  }
  func.func @transform_1(%arg0: i32, %arg1: i32, %arg2: i32) -> (i32, i32) {
    %c0_i32 = arith.constant 0 : i32
    return %arg0, %arg1 : i32, i32
  }
}

</mosaic_0001>

<bundles_post_ra>
// kernel: gradient_penalty_loss.1
= control target key start
LH: loop header
LB: loop body
LE: loop exit
PB: predicated region body
PF: predicated region fallthrough
CT: control target
= control target key end

     0   :  { %s75_s0 = inlined_call_operand.vmem [shape: f32[2,1024], index: 0, kind: input, shape index: {}]   ;;  %s76_s1 = inlined_call_operand.vmem [shape: f32[2,512], index: 1, kind: output, shape index: {}]  }
   0x1   :  { %v36_v0 = vld [vmem:[%s75_s0] sm:$0xff]  ;;  %v54_v1 = vld [vmem:[%s75_s0 + $0x8] sm:$0xff] }
   0x2   :  { %v37_v2 = vmul.f32 %v36_v0, %v36_v0  ;;  %v41_v3 = vmul.f32 %v54_v1, %v54_v1 }
   0x4   :  { %v42_v4 = vadd.f32 %v41_v3, %v37_v2 }
   0x6   :  { %43 = vst [vmem:[%s76_s1] sm:$0xff] %v42_v4 }

</bundles_post_ra>
